<compile_context>
chip_gen: v6e
topology: v6e:2x2x1
jax: 0.10.0
libtpu: 0.0.40
codegen_flags: <defaults>
</compile_context>

<pallas_src>
import functools

import jax
import jax.numpy as jnp
import numpy as np
from jax.experimental import pallas as pl
from jax.experimental.pallas import tpu as pltpu


def _lifted_struct_kernel(x_ref, tcol_ref, trow_ref, out_ref, *,
                          margin, l2_reg, n_pos_pair):
    x = x_ref[...]                                     # (n, d) f32
    n = x.shape[0]
    t_col = tcol_ref[...]                              # (n, 1) int32
    t_row = trow_ref[...]                              # (1, n) int32

    # ---- all pairwise Euclidean distances via ONE MXU matmul (x @ x^T) ----
    gram = jax.lax.dot_general(                        # (n, n) Gram matrix
        x, x, dimension_numbers=(((1,), (1,)), ((), ())),
        preferred_element_type=jnp.float32)
    ri = jax.lax.broadcasted_iota(jnp.int32, (n, n), 0)
    ci = jax.lax.broadcasted_iota(jnp.int32, (n, n), 1)
    eye = jnp.where(ri == ci, 1.0, 0.0)
    diag_col = jnp.sum(gram * eye, axis=1, keepdims=True)   # (n, 1)  ||x_i||^2
    diag_row = jnp.sum(gram * eye, axis=0, keepdims=True)   # (1, n)  ||x_j||^2
    d2 = jnp.maximum(diag_col + diag_row - 2.0 * gram, 0.0)
    dist = jnp.sqrt(d2)                                      # == cdist(x, x)

    # ---- class masks, built in-kernel (no host-side mask DMA) ----
    same = t_col == t_row                              # (n, n) bool
    neg_f = jnp.where(same, 0.0, 1.0)
    upper = ci > ri                                    # strict upper triangle

    # ---- l_n[i] = sum_{target[j] != target[i]} exp(margin - dist[i, j]) ----
    # dist and the negative mask are symmetric, so the axis-0 reduction gives
    # l_n as a row vector without any transpose.
    e = neg_f * jnp.exp(margin - dist)
    ln_col = jnp.sum(e, axis=1, keepdims=True)         # (n, 1) -> l_n[i]
    ln_row = jnp.sum(e, axis=0, keepdims=True)         # (1, n) -> l_n[j]
    loss_neg = jnp.log(ln_col + ln_row)                # (n, n)

    # ---- keep at most n_pos_pair positive pairs (j > i) per anchor i ----
    pos_f = jnp.where(same & upper, 1.0, 0.0)          # candidate pairs
    tri_incl = jnp.where(ri <= ci, 1.0, 0.0)           # U[k, j] = (k <= j)
    rank = jax.lax.dot_general(                        # inclusive cumsum over j
        pos_f, tri_incl, dimension_numbers=(((1,), (0,)), ((), ())),
        preferred_element_type=jnp.float32)
    keep = jnp.where((pos_f > 0.0) & (rank <= float(n_pos_pair)), 1.0, 0.0)

    # ---- lifted-structured hinge^2, averaged over the kept pairs ----
    term = jnp.maximum(loss_neg + dist, 0.0)
    loss_sum = jnp.sum(keep * term * term)
    count = jnp.sum(keep)

    # ---- L2 regularizer: l2_reg * mean_i ||x_i||_2 ----
    sq = jnp.sum(x * x, axis=1, keepdims=True)         # (n, 1), exact row norms
    l2_term = l2_reg * jnp.mean(jnp.sqrt(sq))

    out_ref[0, 0] = loss_sum / count + l2_term


def lifted_struct_loss(x, target, *, margin=0.05, l2_reg=0.02, n_pos_pair=3):
    n, _ = x.shape
    t = target.astype(jnp.int32)
    t_col = t.reshape(n, 1)
    t_row = t.reshape(1, n)

    kernel = functools.partial(
        _lifted_struct_kernel, margin=float(margin), l2_reg=float(l2_reg),
        n_pos_pair=int(n_pos_pair))

    out = pl.pallas_call(
        kernel,
        out_shape=jax.ShapeDtypeStruct((1, 1), jnp.float32),
        in_specs=[pl.BlockSpec(memory_space=pltpu.MemorySpace.VMEM)] * 3,
        out_specs=pl.BlockSpec(memory_space=pltpu.MemorySpace.SMEM),
        compiler_params=pltpu.CompilerParams(
            vmem_limit_bytes=32 * 1024 * 1024),
    )(x.astype(jnp.float32), t_col, t_row)
    return out[0, 0]


def lifted_struct_loss_ref(x, target, *, margin=0.05, l2_reg=0.02,
                           n_pos_pair=3):
    """Pure-numpy reference mirroring the PyTorch forward loop-by-loop."""
    x = np.asarray(x, dtype=np.float64)
    target = np.asarray(target)
    n = x.shape[0]
    diff = x[:, None, :] - x[None, :, :]
    mat = np.sqrt(np.maximum((diff ** 2).sum(-1), 0.0))
    l_n = np.zeros(n)
    for i in range(n):
        neg = target != target[i]
        l_n[i] = np.exp(margin - mat[i][neg]).sum()
    loss, count = 0.0, 0
    for i in range(n):
        m = 0
        for j in range(i + 1, n):
            if target[i] == target[j]:
                loss_neg = np.log(l_n[i] + l_n[j])
                loss_pos = mat[i, j]
                loss += max(loss_neg + loss_pos, 0.0) ** 2
                count += 1
                m += 1
                if m >= n_pos_pair:
                    break
    l2_loss = l2_reg * np.mean(np.sqrt((x ** 2).sum(axis=1)))
    return loss / count + l2_loss


if __name__ == "__main__":
    # Small deterministic problem: batch=8 embeddings of dim=32, 3 classes.
    # Class layout [0,0,0,0,1,1,2,2] with n_pos_pair=2 exercises both the
    # positive-pair accumulation and the per-anchor n_pos_pair truncation.
    B, dim = 8, 32
    key = jax.random.PRNGKey(0)
    x = jax.random.normal(key, (B, dim), dtype=jnp.float32)
    target = jnp.array([0, 0, 0, 0, 1, 1, 2, 2], dtype=jnp.int32)

    margin, l2_reg, n_pos_pair = 0.05, 0.02, 2

    loss = lifted_struct_loss(x, target, margin=margin, l2_reg=l2_reg,
                              n_pos_pair=n_pos_pair)
    loss = jax.block_until_ready(loss)

    ref = lifted_struct_loss_ref(x, target, margin=margin, l2_reg=l2_reg,
                                 n_pos_pair=n_pos_pair)

    assert jnp.isfinite(loss), "kernel produced non-finite loss"
    assert jnp.allclose(loss, ref, rtol=1e-3, atol=1e-3), (float(loss), float(ref))
    print("KERNEL_OK")
</pallas_src>

<mosaic_0001>
module attributes {stable_mosaic.version = 11 : i64} {
  func.func @_lifted_struct_kernel(%arg0: memref<8x32xf32, #tpu.memory_space<vmem>>, %arg1: memref<8x1xi32, #tpu.memory_space<vmem>>, %arg2: memref<1x8xi32, #tpu.memory_space<vmem>>, %arg3: memref<1x1xf32, #tpu.memory_space<smem>>) attributes {dimension_semantics = [], scalar_prefetch = 0 : i64, scratch_operands = 0 : i64, tpu.core_type = #tpu.core_type<tc>} {
    %c0 = arith.constant 0 : index
    %c0_0 = arith.constant 0 : index
    %0 = vector.load %arg0[%c0, %c0_0] : memref<8x32xf32, #tpu.memory_space<vmem>>, vector<8x32xf32>
    %c0_1 = arith.constant 0 : index
    %c0_2 = arith.constant 0 : index
    %1 = vector.load %arg1[%c0_1, %c0_2] : memref<8x1xi32, #tpu.memory_space<vmem>>, vector<8x1xi32>
    %c0_3 = arith.constant 0 : index
    %c0_4 = arith.constant 0 : index
    %2 = vector.load %arg2[%c0_3, %c0_4] : memref<1x8xi32, #tpu.memory_space<vmem>>, vector<1x8xi32>
    %cst = arith.constant dense<0.000000e+00> : vector<8x8xf32>
    %3 = tpu.matmul %0, %0, %cst {dimension_numbers = #tpu.dot_dimension_numbers<[1], [1], [0], [0], [0, 0, 1, 0], [], []>} : vector<8x32xf32>, vector<8x32xf32>, vector<8x8xf32> -> vector<8x8xf32>
    %4 = tpu.iota {dimensions = array<i32: 0>} : vector<8x8xi32>
    %5 = tpu.iota {dimensions = array<i32: 1>} : vector<8x8xi32>
    %6 = arith.cmpi eq, %4, %5 : vector<8x8xi32>
    %cst_5 = arith.constant 1.000000e+00 : f32
    %cst_6 = arith.constant 0.000000e+00 : f32
    %7 = vector.broadcast %cst_5 : f32 to vector<8x8xf32>
    %8 = vector.broadcast %cst_6 : f32 to vector<8x8xf32>
    %9 = arith.select %6, %7, %8 : vector<8x8xi1>, vector<8x8xf32>
    %10 = arith.mulf %3, %9 : vector<8x8xf32>
    %cst_7 = arith.constant dense<0.000000e+00> : vector<8xf32>
    %11 = vector.multi_reduction <add>, %10, %cst_7 [1] : vector<8x8xf32> to vector<8xf32>
    %12 = vector.shape_cast %11 : vector<8xf32> to vector<8x1xf32>
    %13 = arith.mulf %3, %9 : vector<8x8xf32>
    %cst_8 = arith.constant dense<0.000000e+00> : vector<8xf32>
    %14 = vector.multi_reduction <add>, %13, %cst_8 [0] : vector<8x8xf32> to vector<8xf32>
    %15 = vector.shape_cast %14 : vector<8xf32> to vector<1x8xf32>
    %16 = vector.broadcast %12 : vector<8x1xf32> to vector<8x8xf32>
    %17 = vector.broadcast %15 : vector<1x8xf32> to vector<8x8xf32>
    %18 = arith.addf %16, %17 : vector<8x8xf32>
    %cst_9 = arith.constant 2.000000e+00 : f32
    %19 = vector.broadcast %cst_9 : f32 to vector<8x8xf32>
    %20 = arith.mulf %19, %3 : vector<8x8xf32>
    %21 = arith.subf %18, %20 : vector<8x8xf32>
    %cst_10 = arith.constant 0.000000e+00 : f32
    %22 = vector.broadcast %cst_10 : f32 to vector<8x8xf32>
    %23 = arith.maximumf %21, %22 : vector<8x8xf32>
    %24 = math.sqrt %23 : vector<8x8xf32>
    %25 = vector.broadcast %1 : vector<8x1xi32> to vector<8x8xi32>
    %26 = vector.broadcast %2 : vector<1x8xi32> to vector<8x8xi32>
    %27 = arith.cmpi eq, %25, %26 : vector<8x8xi32>
    %cst_11 = arith.constant 0.000000e+00 : f32
    %cst_12 = arith.constant 1.000000e+00 : f32
    %28 = vector.broadcast %cst_11 : f32 to vector<8x8xf32>
    %29 = vector.broadcast %cst_12 : f32 to vector<8x8xf32>
    %30 = arith.select %27, %28, %29 : vector<8x8xi1>, vector<8x8xf32>
    %31 = arith.cmpi sgt, %5, %4 : vector<8x8xi32>
    %cst_13 = arith.constant 5.000000e-02 : f32
    %32 = vector.broadcast %cst_13 : f32 to vector<8x8xf32>
    %33 = arith.subf %32, %24 : vector<8x8xf32>
    %34 = math.exp %33 : vector<8x8xf32>
    %35 = arith.mulf %30, %34 : vector<8x8xf32>
    %cst_14 = arith.constant dense<0.000000e+00> : vector<8xf32>
    %36 = vector.multi_reduction <add>, %35, %cst_14 [1] : vector<8x8xf32> to vector<8xf32>
    %37 = vector.shape_cast %36 : vector<8xf32> to vector<8x1xf32>
    %cst_15 = arith.constant dense<0.000000e+00> : vector<8xf32>
    %38 = vector.multi_reduction <add>, %35, %cst_15 [0] : vector<8x8xf32> to vector<8xf32>
    %39 = vector.shape_cast %38 : vector<8xf32> to vector<1x8xf32>
    %40 = vector.broadcast %37 : vector<8x1xf32> to vector<8x8xf32>
    %41 = vector.broadcast %39 : vector<1x8xf32> to vector<8x8xf32>
    %42 = arith.addf %40, %41 : vector<8x8xf32>
    %43 = math.log %42 : vector<8x8xf32>
    %44 = arith.andi %27, %31 : vector<8x8xi1>
    %cst_16 = arith.constant 1.000000e+00 : f32
    %cst_17 = arith.constant 0.000000e+00 : f32
    %45 = vector.broadcast %cst_16 : f32 to vector<8x8xf32>
    %46 = vector.broadcast %cst_17 : f32 to vector<8x8xf32>
    %47 = arith.select %44, %45, %46 : vector<8x8xi1>, vector<8x8xf32>
    %48 = arith.cmpi sle, %4, %5 : vector<8x8xi32>
    %cst_18 = arith.constant 1.000000e+00 : f32
    %cst_19 = arith.constant 0.000000e+00 : f32
    %49 = vector.broadcast %cst_18 : f32 to vector<8x8xf32>
    %50 = vector.broadcast %cst_19 : f32 to vector<8x8xf32>
    %51 = arith.select %48, %49, %50 : vector<8x8xi1>, vector<8x8xf32>
    %cst_20 = arith.constant dense<0.000000e+00> : vector<8x8xf32>
    %52 = tpu.matmul %47, %51, %cst_20 {dimension_numbers = #tpu.dot_dimension_numbers<[1], [0], [0], [1], [0, 0, 1, 1], [], []>} : vector<8x8xf32>, vector<8x8xf32>, vector<8x8xf32> -> vector<8x8xf32>
    %cst_21 = arith.constant 0.000000e+00 : f32
    %53 = vector.broadcast %cst_21 : f32 to vector<8x8xf32>
    %54 = arith.cmpf ogt, %47, %53 : vector<8x8xf32>
    %cst_22 = arith.constant 2.000000e+00 : f32
    %55 = vector.broadcast %cst_22 : f32 to vector<8x8xf32>
    %56 = arith.cmpf ole, %52, %55 : vector<8x8xf32>
    %57 = arith.andi %54, %56 : vector<8x8xi1>
    %cst_23 = arith.constant 1.000000e+00 : f32
    %cst_24 = arith.constant 0.000000e+00 : f32
    %58 = vector.broadcast %cst_23 : f32 to vector<8x8xf32>
    %59 = vector.broadcast %cst_24 : f32 to vector<8x8xf32>
    %60 = arith.select %57, %58, %59 : vector<8x8xi1>, vector<8x8xf32>
    %61 = arith.addf %43, %24 : vector<8x8xf32>
    %cst_25 = arith.constant 0.000000e+00 : f32
    %62 = vector.broadcast %cst_25 : f32 to vector<8x8xf32>
    %63 = arith.maximumf %61, %62 : vector<8x8xf32>
    %64 = arith.mulf %60, %63 : vector<8x8xf32>
    %65 = arith.mulf %64, %63 : vector<8x8xf32>
    %66 = vector.shape_cast %65 : vector<8x8xf32> to vector<1x8x8xf32>
    %cst_26 = arith.constant dense<0.000000e+00> : vector<1xf32>
    %67 = vector.multi_reduction <add>, %66, %cst_26 [1, 2] : vector<1x8x8xf32> to vector<1xf32>
    %68 = vector.shape_cast %67 : vector<1xf32> to vector<1x1x1xf32>
    %69 = vector.extract %68[0, 0, 0] : f32 from vector<1x1x1xf32>
    %70 = vector.shape_cast %60 : vector<8x8xf32> to vector<1x8x8xf32>
    %cst_27 = arith.constant dense<0.000000e+00> : vector<1xf32>
    %71 = vector.multi_reduction <add>, %70, %cst_27 [1, 2] : vector<1x8x8xf32> to vector<1xf32>
    %72 = vector.shape_cast %71 : vector<1xf32> to vector<1x1x1xf32>
    %73 = vector.extract %72[0, 0, 0] : f32 from vector<1x1x1xf32>
    %74 = arith.mulf %0, %0 : vector<8x32xf32>
    %cst_28 = arith.constant dense<0.000000e+00> : vector<8xf32>
    %75 = vector.multi_reduction <add>, %74, %cst_28 [1] : vector<8x32xf32> to vector<8xf32>
    %76 = vector.shape_cast %75 : vector<8xf32> to vector<8x1xf32>
    %77 = math.sqrt %76 : vector<8x1xf32>
    %78 = vector.shape_cast %77 : vector<8x1xf32> to vector<1x8x1xf32>
    %cst_29 = arith.constant dense<0.000000e+00> : vector<1xf32>
    %79 = vector.multi_reduction <add>, %78, %cst_29 [1, 2] : vector<1x8x1xf32> to vector<1xf32>
    %80 = vector.shape_cast %79 : vector<1xf32> to vector<1x1x1xf32>
    %81 = vector.extract %80[0, 0, 0] : f32 from vector<1x1x1xf32>
    %cst_30 = arith.constant 8.000000e+00 : f32
    %82 = arith.divf %81, %cst_30 : f32
    %cst_31 = arith.constant 2.000000e-02 : f32
    %83 = arith.mulf %cst_31, %82 : f32
    %84 = arith.divf %69, %73 : f32
    %85 = arith.addf %84, %83 : f32
    %c0_32 = arith.constant 0 : index
    %c0_33 = arith.constant 0 : index
    %86 = memref.load %arg3[%c0_32, %c0_33] : memref<1x1xf32, #tpu.memory_space<smem>>
    memref.store %85, %arg3[%c0_32, %c0_33] : memref<1x1xf32, #tpu.memory_space<smem>>
    return
  }
}

</mosaic_0001>

<bundles_post_ra>
// kernel: tpu_custom_call.1
= control target key start
LH: loop header
LB: loop body
LE: loop exit
PB: predicated region body
PF: predicated region fallthrough
CT: control target
= control target key end

     0   :  { %vm18_vm0 = vcmask 261120   ;;  %v350_v2 = vmov 0   ;;  %v351_v3 = vmov 0.0   ;;  %v92_v4 = vlaneseq  ;;  %s416_s0 = inlined_call_operand.vmem [shape: f32[8,32], index: 0, kind: input, shape index: {}]   ;;  %s417_s1 = inlined_call_operand.vmem [shape: s32[8,1], index: 1, kind: input, shape index: {}]   ;;  %s418_s2 = inlined_call_operand.vmem [shape: s32[1,8], index: 2, kind: input, shape index: {}]   ;;  %s419_s3 = inlined_call_operand.hbm [shape: f32[1,1], index: 3, kind: output, shape index: {}]  }
   0x1   :  { %v16_v0 = vld [vmem:[%s417_s1] sm:$0xff]  ;;  %329 = vset.pattern.permute.xlu0 %v350_v2  ;;  %306 = vmatprep.subr.mxu0 %v351_v3 }
   0x2   :  { %v381_v1 = vld [vmem:[%s416_s0] sm:$0xff] }
   0x3   :  { %8 = vsyncpa [#allocation3], 0  ;;  %121 = vperm.xlu0 %329, %v16_v0   ;;  %307 = vmatpush3.xpose.msk.msra.mxu0 %vm18_vm0, %v381_v1  ;;  %vm352_vm1 = vmmov 0   ;;  %v93_v5 = vshrl.u32 %v92_v4, 7  ;;  %v95_v6 = vand.u32 127, %v92_v4  ;;  %v353_v7 = vmov 1.0  }
   0x4   :  { %308 = vmatprep.mubr.msk.f32.mxu0 %vm352_vm1, %v351_v3  ;;  %311 = vmatprep.subr.mxu1 %v351_v3  ;;  %v299_v8 = vld [vmem:[%s418_s2] ss:$0 sm:$0xff]  ;;  %vm99_vm6 = vcmask 64512   ;;  %v251_v40 = vmul.f32 %v381_v1, %v381_v1  ;;  %vm262_vm15 = vcmask 7168   ;;  %s354_s23 = smov [#allocation2]  }
   0x5   :  { %313 = vmatprep.mubr.msk.f32.mxu1 %vm352_vm1, %v351_v3  ;;  %vm129_vm2 = vcmp.gt.s32.totalorder %v95_v6, %v93_v5  ;;  %vm148_vm3 = vcmp.le.s32.totalorder %v93_v5, %v95_v6  ;;  %vm96_vm4 = vcmp.eq.s32.totalorder %v93_v5, %v95_v6 }
   0x6   :  { %309 = vmatmul.mubr.msk.f32.vlgmr.msra.gmra.mxu0 %vm18_vm0, %v381_v1  ;;  %312 = vmatpush3.msk.msra.mxu1 %vm148_vm3, %v353_v7  ;;  %v97_v11 = vsel %vm96_vm4, 1.0, %v351_v3  ;;  %v252_v42 = vsel %vm18_vm0, %v251_v40, 0.0 }
  0x7e   :  { %v122_v9 = vpop.permute.xlu0 %121 }
  0x7f   :  { %vm127_vm5 = vcmp.eq.s32.totalorder %v122_v9, %v299_v8 }
  0x80   :  { %vm146_vm7 = vmand %vm127_vm5, %vm129_vm2  ;;  %v128_v38 = vsel %vm127_vm5, 0.0, %v353_v7 }
  0x81   :  { %v147_v10 = vsel %vm146_vm7, 1.0, %v351_v3 }
  0x82   :  { %314 = vmatmul.mubr.msk.f32.vlgmr.msra.gmra.mxu1 %vm99_vm6, %v147_v10  ;;  %vm223_vm8 = vcmp.gt.f32.partialorder %v147_v10, 0.0 }
  0xc6   :  { %v88_v12 = vpop.f32.mrf.mxu0 }
  0xc7   :  { %v98_v13 = vmul.f32 %v97_v11, %v88_v12  ;;  %v110_v26 = vmul.f32 2.0, %v88_v12 }
  0xc8   :  { %v310_v14 = vpop.f32.mrf.mxu0 }
  0xc9   :  { %v100_v15 = vsel %vm99_vm6, %v98_v13, 0.0 }
  0xca   :  { %101 = vadd.xlane.f32.xlu0 %v100_v15  ;;  %v103_v16 = vrot.slane %v100_v15, 4 }
  0xcc   :  { %v104_v17 = vadd.f32 %v103_v16, %v100_v15 }
  0xce   :  { %v105_v21 = vrot.slane %v104_v17, 2 }
  0xd0   :  { %v106_v22 = vadd.f32 %v105_v21, %v104_v17 }
  0xd2   :  { %v107_v23 = vrot.slane %v106_v22, 1 }
  0xd4   :  { %v108_v24 = vadd.f32 %v107_v23, %v106_v22 }
 0x142   :  { %v219_v18 = vpop.f32.mrf.mxu1 }
 0x143   :  { %vm224_vm9 = vcmp.le.f32.partialorder %v219_v18, 2.0 }
 0x144   :  { %vm399_vm10 = vmand %vm223_vm8, %vm224_vm9  ;;  %v315_v20 = vpop.f32.mrf.mxu1 }
 0x145   :  { %v226_v57 = vsel %vm399_vm10, 1.0, %v351_v3 }
 0x146   :  { %v241_v1 = vsel %vm99_vm6, %v226_v57, 0.0 }
 0x153   :  { %v102_v25 = vpop.xlane.xlu0 %101 }
 0x154   :  { %v109_v27 = vadd.f32 %v108_v24, %v102_v25 }
 0x156   :  { %v111_v28 = vsub.f32 %v109_v27, %v110_v26 }
 0x158   :  { %v112_v29 = vmax.f32 %v111_v28, 0.0 }
 0x15a   :  { %330 = vrsqrt.f32 %v112_v29  ;;  %vm115_vm11 = vcmp.eq.f32.partialorder %v112_v29, inf  ;;  %v118_v32 = vand.u32 2147483648, %v112_v29  ;;  %vm117_vm12 = vcmp.eq.f32.partialorder %v112_v29, 0.0 }
 0x167   :  { %v331_v30 = vpop.eup %330 }
 0x168   :  { %v114_v31 = vmul.f32 %v331_v30, %v112_v29 }
 0x16a   :  { %v116_v33 = vsel %vm115_vm11, %v112_v29, %v114_v31 }
 0x16b   :  { %v119_v34 = vsel %vm117_vm12, %v118_v32, %v116_v33 }
 0x16c   :  { %v130_v35 = vsub.f32 0.05, %v119_v34 }
 0x16e   :  { %v131_v36 = vmul.f32 1.442695, %v130_v35 }
 0x170   :  { %332 = vpow2.f32 %v131_v36 }
 0x17d   :  { %v333_v37 = vpop.eup %332 }
 0x17e   :  { %v133_v39 = vmul.f32 %v333_v37, %v128_v38 }
 0x180   :  { %v134_v41 = vsel %vm99_vm6, %v133_v39, 0.0 }
 0x181   :  { %135 = vadd.xlane.f32.xlu1 %v134_v41  ;;  %v137_v43 = vrot.slane %v134_v41, 4 }
 0x183   :  { %v138_v44 = vadd.f32 %v137_v43, %v134_v41 }
 0x185   :  { %253 = vadd.xlane.f32.xlu1 %v252_v42  ;;  %v139_v45 = vrot.slane %v138_v44, 2 }
 0x187   :  { %v140_v46 = vadd.f32 %v139_v45, %v138_v44 }
 0x189   :  { %v141_v47 = vrot.slane %v140_v46, 1 }
 0x18b   :  { %v142_v48 = vadd.f32 %v141_v47, %v140_v46 }
 0x20a   :  { %v136_v49 = vpop.xlane.xlu1 %135 }
 0x20b   :  { %v143_v50 = vadd.f32 %v142_v48, %v136_v49 }
 0x20d   :  { %334 = vlog2.f32 %v143_v50 }
 0x20e   :  { %v254_v51 = vpop.xlane.xlu1 %253 }
 0x20f   :  { %336 = vrsqrt.f32 %v254_v51  ;;  %vm257_vm13 = vcmp.eq.f32.partialorder %v254_v51, inf  ;;  %v260_v61 = vand.u32 2147483648, %v254_v51  ;;  %vm259_vm14 = vcmp.eq.f32.partialorder %v254_v51, 0.0 }
 0x21a   :  { %v335_v52 = vpop.eup %334 }
 0x21b   :  { %v145_v53 = vmul.f32 0.6931472, %v335_v52 }
 0x21c   :  { %v337_v55 = vpop.eup %336 }
 0x21d   :  { %v227_v54 = vadd.f32 %v145_v53, %v119_v34  ;;  %v256_v59 = vmul.f32 %v337_v55, %v254_v51 }
 0x21f   :  { %v228_v56 = vmax.f32 %v227_v54, 0.0  ;;  %v258_v63 = vsel %vm257_vm13, %v254_v51, %v256_v59 }
 0x220   :  { %v261_v0 = vsel %vm259_vm14, %v260_v61, %v258_v63 }
 0x221   :  { %v229_v58 = vmul.f32 %v228_v56, %v226_v57  ;;  %v263_v2 = vsel %vm262_vm15, %v261_v0, 0.0 }
 0x223   :  { %v230_v60 = vmul.f32 %v229_v58, %v228_v56 }
 0x225   :  { %v231_v62 = vsel %vm99_vm6, %v230_v60, 0.0 }
 0x226   :  { %232 = vadd.xlane.f32.xlu1 %v231_v62 }
 0x22a   :  { %242 = vadd.xlane.f32.xlu1 %v241_v1 }
 0x22e   :  { %264 = vadd.xlane.f32.xlu1 %v263_v2 }
 0x2af   :  { %v233_v4 = vpop.xlane.xlu1 %232 }
 0x2b0   :  { %v234_v5 = vrot.slane %v233_v4, 4 }
 0x2b2   :  { %v235_v3 = vadd.f32 %v234_v5, %v233_v4 }
 0x2b3   :  { %v243_v6 = vpop.xlane.xlu1 %242 }
 0x2b4   :  { %v236_v7 = vrot.slane %v235_v3, 2  ;;  %v244_v8 = vrot.slane %v243_v6, 4 }
 0x2b6   :  { %v245_v9 = vadd.f32 %v244_v8, %v243_v6  ;;  %v237_v10 = vadd.f32 %v236_v7, %v235_v3 }
 0x2b7   :  { %v265_v11 = vpop.xlane.xlu1 %264 }
 0x2b8   :  { %v246_v12 = vrot.slane %v245_v9, 2  ;;  %v238_v13 = vrot.slane %v237_v10, 1  ;;  %v266_v14 = vrot.slane %v265_v11, 4 }
 0x2ba   :  { %v239_v15 = vadd.f32 %v238_v13, %v237_v10  ;;  %v247_v16 = vadd.f32 %v246_v12, %v245_v9  ;;  %v267_v17 = vadd.f32 %v266_v14, %v265_v11 }
 0x2bc   :  { %316 = vpush %v239_v15  ;;  %v248_v18 = vrot.slane %v247_v16, 1  ;;  %v268_v19 = vrot.slane %v267_v17, 2 }
 0x2be   :  { %v249_v20 = vadd.f32 %v248_v18, %v247_v16  ;;  %v269_v21 = vadd.f32 %v268_v19, %v267_v17 }
 0x2c0   :  { %318 = vpush %v249_v20  ;;  %v270_v22 = vrot.slane %v269_v21, 1 }
 0x2c2   :  { %v271_v23 = vadd.f32 %v270_v22, %v269_v21 }
 0x2c4   :  { %320 = vpush %v271_v23 }
 0x2ed   :  { %s317_s2 = spop %316 }
 0x2f1   :  { %s319_s16 = spop %318 }
 0x2f2   :  { %v277_v24 = vstv %s319_s16 }
 0x2f3   :  { %338 = vrcp.f32 %v277_v24 }
 0x2f5   :  { %s321_s17 = spop %320 }
 0x2f6   :  { %s275_s18 = smul.f32 0.125, %s321_s17 }
 0x2f8   :  { %s276_s19 = smul.f32 0.02, %s275_s18 }
 0x300   :  { %v339_v25 = vpop.eup %338 }
 0x301   :  { %322 = vpush %v339_v25 }
 0x332   :  { %s323_s20 = spop %322 }
 0x333   :  { %s280_s21 = smul.f32 %s323_s20, %s317_s2 }
 0x335   :  { %s281_s22 = sadd.f32 %s280_s21, %s276_s19 }
 0x337   :  { %283 = sst [smem:[#allocation2]] %s281_s22 }
 0x338   :  { %291 = dma.smem_to_hbm %s354_s23, 16, %s419_s3, [#allocation3]  }
 0x339   :  { %348 = dma.done.wait [#allocation3], 16  }
 0x33a   :  { %349 = vsyncadd [#allocation3], 4294967280 }
 0x33b   :  { %295 = sfence }
 0x33c   :  { %296 = vsyncpa [#allocation3], 1 }

</bundles_post_ra>
